<compile_context>
chip_gen: v7x
topology: tpu7x:2x2x1
jax: 0.10.0
libtpu: 0.0.40
codegen_flags: <defaults>
</compile_context>

<pallas_src>
import math
import functools

import jax
import jax.numpy as jnp
from jax import lax
from jax.experimental import pallas as pl
from jax.experimental.pallas import tpu as pltpu


# ----------------------------------------------------------------------------
# Tile selection: largest aligned divisor <= preferred, else full extent.
# ----------------------------------------------------------------------------
def _pick_tile(dim, preferred, align):
    if dim <= preferred:
        return dim                      # full-extent block (always legal)
    t = (preferred // align) * align
    while t >= align:
        if dim % t == 0:
            return t
        t -= align
    # TODO(synk): masked tail handling for dims with no aligned divisor.
    return dim


# ----------------------------------------------------------------------------
# Linear:  y = x @ W_t + b   (W_t is the pre-transposed (K, N) weight, bf16)
# ----------------------------------------------------------------------------
def _matmul_kernel(x_ref, w_ref, b_ref, o_ref, acc_ref):
    # x_ref: (tm, tk)  w_ref: (tk, tn) bf16  b_ref: (1, tn) f32
    # o_ref: (tm, tn)  acc_ref: (tm, tn) f32
    @pl.when(pl.program_id(2) == 0)
    def _init():
        acc_ref[...] = jnp.zeros_like(acc_ref)

    acc_ref[...] += jnp.dot(
        x_ref[...].astype(jnp.bfloat16), w_ref[...],
        preferred_element_type=jnp.float32)

    @pl.when(pl.program_id(2) == pl.num_programs(2) - 1)
    def _finalize():
        o_ref[...] = (acc_ref[...] + b_ref[...].astype(jnp.float32)).astype(o_ref.dtype)


def linear(x2d, w_t, b_row, *, out_dtype=None, tm=256, tn=256, tk=512):
    """x2d: (M, K); w_t: (K, N) bf16 pre-transposed; b_row: (1, N) f32 -> (M, N)."""
    M, K = x2d.shape
    K2, N = w_t.shape
    assert K == K2
    out_dtype = out_dtype or x2d.dtype
    tm = _pick_tile(M, tm, 8)
    tn = _pick_tile(N, tn, 128)
    tk = _pick_tile(K, tk, 128)
    return pl.pallas_call(
        _matmul_kernel,
        out_shape=jax.ShapeDtypeStruct((M, N), out_dtype),
        grid=(M // tm, N // tn, K // tk),
        in_specs=[
            pl.BlockSpec((tm, tk), lambda i, j, k: (i, k)),
            pl.BlockSpec((tk, tn), lambda i, j, k: (k, j)),
            pl.BlockSpec((1, tn), lambda i, j, k: (0, j)),
        ],
        out_specs=pl.BlockSpec((tm, tn), lambda i, j, k: (i, j)),
        scratch_shapes=[pltpu.VMEM((tm, tn), jnp.float32)],
        compiler_params=pltpu.CompilerParams(
            dimension_semantics=("parallel", "parallel", "arbitrary")),
    )(x2d, w_t, b_row)


# ----------------------------------------------------------------------------
# Attention core: flash-style online softmax over KV tiles, per (batch*head).
# ----------------------------------------------------------------------------
def _mha_kernel(q_ref, k_ref, v_ref, o_ref, m_sc, l_sc, acc_sc, *, sm_scale):
    # q_ref: (1, tq, dk)  k_ref/v_ref: (1, tk, dk)  o_ref: (1, tq, dk)
    # m_sc/l_sc: (tq, 1) f32   acc_sc: (tq, dk) f32
    @pl.when(pl.program_id(2) == 0)
    def _init():
        m_sc[...] = jnp.full(m_sc.shape, -jnp.inf, dtype=m_sc.dtype)
        l_sc[...] = jnp.zeros_like(l_sc)
        acc_sc[...] = jnp.zeros_like(acc_sc)

    # Fold 1/sqrt(dk) into q (dk lanes per row, cheaper than scaling (tq, tk) scores).
    q = (q_ref[0].astype(jnp.float32) * sm_scale).astype(jnp.bfloat16)   # (tq, dk)
    k = k_ref[0].astype(jnp.bfloat16)                                    # (tk, dk)
    v = v_ref[0].astype(jnp.bfloat16)                                    # (tk, dk)

    # q @ k^T without materializing a transposed K tile.
    s = lax.dot_general(q, k, (((1,), (1,)), ((), ())),
                        preferred_element_type=jnp.float32)              # (tq, tk)
    # TODO(synk): attention-mask path (masked_fill(mask==0, -1e9)) not wired in.

    m_prev = m_sc[...]
    m_new = jnp.maximum(m_prev, s.max(axis=-1, keepdims=True))
    alpha = jnp.exp(m_prev - m_new)
    # TODO(synk): on v6e/v7x a bf16 exp roughly doubles EUP throughput; kept f32 for
    # generation-agnostic accuracy (v5e EUP has no bf16).
    p = jnp.exp(s - m_new)                                               # (tq, tk) f32

    l_sc[...] = alpha * l_sc[...] + p.sum(axis=-1, keepdims=True)
    acc_sc[...] = alpha * acc_sc[...] + jnp.dot(
        p.astype(jnp.bfloat16), v, preferred_element_type=jnp.float32)
    m_sc[...] = m_new

    @pl.when(pl.program_id(2) == pl.num_programs(2) - 1)
    def _finalize():
        # TODO(synk): training-mode attention dropout not implemented (eval semantics).
        inv_l = pl.reciprocal(l_sc[...], approx=True)
        o_ref[0] = (acc_sc[...] * inv_l).astype(o_ref.dtype)


def attention(q, k, v, *, q_tile=256, kv_tile=256):
    """q: (BH, Sq, dk); k, v: (BH, Skv, dk). Returns (BH, Sq, dk) in q.dtype."""
    BH, Sq, dk = q.shape
    Skv = k.shape[1]
    tq = _pick_tile(Sq, q_tile, 8)
    tk = _pick_tile(Skv, kv_tile, 8)
    sm_scale = 1.0 / math.sqrt(dk)
    kernel = functools.partial(_mha_kernel, sm_scale=sm_scale)
    # TODO(synk): for v5e with dk < 128, processing >=2 heads per block would make the
    # o_ref store lane-dense; kept single-head blocks for simplicity/robustness.
    return pl.pallas_call(
        kernel,
        out_shape=jax.ShapeDtypeStruct((BH, Sq, dk), q.dtype),
        grid=(BH, Sq // tq, Skv // tk),
        in_specs=[
            pl.BlockSpec((1, tq, dk), lambda b, qi, ki: (b, qi, 0)),
            pl.BlockSpec((1, tk, dk), lambda b, qi, ki: (b, ki, 0)),
            pl.BlockSpec((1, tk, dk), lambda b, qi, ki: (b, ki, 0)),
        ],
        out_specs=pl.BlockSpec((1, tq, dk), lambda b, qi, ki: (b, qi, 0)),
        scratch_shapes=[
            pltpu.VMEM((tq, 1), jnp.float32),    # running max
            pltpu.VMEM((tq, 1), jnp.float32),    # running denom
            pltpu.VMEM((tq, dk), jnp.float32),   # running numerator
        ],
        compiler_params=pltpu.CompilerParams(
            dimension_semantics=("parallel", "parallel", "arbitrary")),
    )(q, k, v)


# ----------------------------------------------------------------------------
# One-time parameter prep: fuse QKV, pre-transpose, cast weights to bf16.
# ----------------------------------------------------------------------------
def prepare_params(raw):
    D = raw["wq"].shape[0]
    w_qkv = jnp.concatenate([raw["wq"], raw["wk"], raw["wv"]], axis=0)        # (3D, D)
    return {
        "w_qkv_t": jnp.asarray(w_qkv).T.astype(jnp.bfloat16),                 # (D, 3D)
        "b_qkv": jnp.concatenate([raw["bq"], raw["bk"], raw["bv"]])
                   .reshape(1, 3 * D).astype(jnp.float32),
        "w_o_t": jnp.asarray(raw["wo"]).T.astype(jnp.bfloat16),               # (D, D)
        "b_o": jnp.asarray(raw["bo"]).reshape(1, D).astype(jnp.float32),
    }


# ----------------------------------------------------------------------------
# Full module forward
# ----------------------------------------------------------------------------
def multi_head_attention_forward(query, key, value, params, n_heads, mask=None):
    """query: (B, Sq, D); key/value: (B, Skv, D); params from prepare_params()."""
    assert mask is None, "TODO(synk): mask path not implemented"
    B, Sq, D = query.shape
    Skv = key.shape[1]
    H = n_heads
    dk = D // H

    w_qkv_t, b_qkv = params["w_qkv_t"], params["b_qkv"]

    if (query is key) and (key is value):
        # Fused QKV projection: one pass over the activations, 3x wider N tile.
        qkv = linear(query.reshape(B * Sq, D), w_qkv_t, b_qkv,
                     out_dtype=jnp.bfloat16)                                   # (B*Sq, 3D)
        # TODO(synk): the head split could be folded into the attention BlockSpec for
        # dk >= 128; at small dk this single XLA transpose (on bf16 data) is cheaper/safer.
        qkv = qkv.reshape(B, Sq, 3, H, dk).transpose(2, 0, 3, 1, 4)            # (3,B,H,Sq,dk)
        Q = qkv[0].reshape(B * H, Sq, dk)
        K = qkv[1].reshape(B * H, Sq, dk)
        V = qkv[2].reshape(B * H, Skv, dk)
    else:
        def proj_split(x, s, col):
            y = linear(x.reshape(B * s, D),
                       w_qkv_t[:, col * D:(col + 1) * D],
                       b_qkv[:, col * D:(col + 1) * D],
                       out_dtype=jnp.bfloat16)
            return (y.reshape(B, s, H, dk).transpose(0, 2, 1, 3)
                     .reshape(B * H, s, dk))
        Q = proj_split(query, Sq, 0)
        K = proj_split(key, Skv, 1)
        V = proj_split(value, Skv, 2)

    ctx = attention(Q, K, V)                                                   # (B*H, Sq, dk) bf16
    ctx = (ctx.reshape(B, H, Sq, dk)
              .transpose(0, 2, 1, 3)
              .reshape(B * Sq, D))

    out = linear(ctx, params["w_o_t"], params["b_o"], out_dtype=jnp.float32)
    return out.reshape(B, Sq, D)


# ----------------------------------------------------------------------------
# Pure-JAX f32 reference (mirrors the PyTorch forward in eval mode, mask=None)
# ----------------------------------------------------------------------------
def ref_forward(query, key, value, raw, n_heads):
    B, Sq, D = query.shape
    Skv = key.shape[1]
    dk = D // n_heads
    q = query @ raw["wq"].T + raw["bq"]
    k = key @ raw["wk"].T + raw["bk"]
    v = value @ raw["wv"].T + raw["bv"]
    Q = q.reshape(B, Sq, n_heads, dk).transpose(0, 2, 1, 3)
    K = k.reshape(B, Skv, n_heads, dk).transpose(0, 2, 1, 3)
    V = v.reshape(B, Skv, n_heads, dk).transpose(0, 2, 1, 3)
    scores = jnp.einsum("bhqd,bhkd->bhqk", Q, K) / math.sqrt(dk)
    attn = jax.nn.softmax(scores, axis=-1)
    ctx = jnp.einsum("bhqk,bhkd->bhqd", attn, V)
    ctx = ctx.transpose(0, 2, 1, 3).reshape(B, Sq, D)
    return ctx @ raw["wo"].T + raw["bo"]


if __name__ == "__main__":
    d_x, n_heads, B, S = 64, 4, 2, 16

    key0 = jax.random.PRNGKey(0)
    keys = jax.random.split(key0, 9)
    bound = 1.0 / math.sqrt(d_x)

    def lin_params(kw, kb):
        w = jax.random.uniform(kw, (d_x, d_x), jnp.float32, -bound, bound)
        b = jax.random.uniform(kb, (d_x,), jnp.float32, -bound, bound)
        return w, b

    wq, bq = lin_params(keys[0], keys[1])
    wk, bk = lin_params(keys[2], keys[3])
    wv, bv = lin_params(keys[4], keys[5])
    wo, bo = lin_params(keys[6], keys[7])
    raw = dict(wq=wq, bq=bq, wk=wk, bk=bk, wv=wv, bv=bv, wo=wo, bo=bo)
    params = prepare_params(raw)

    x = jax.random.normal(keys[8], (B, S, d_x), dtype=jnp.float32)

    out = multi_head_attention_forward(x, x, x, params, n_heads)
    out = jax.block_until_ready(out)

    ref = ref_forward(x, x, x, raw, n_heads)
    assert out.shape == (B, S, d_x)
    max_err = float(jnp.max(jnp.abs(out - ref)))
    # bf16 MXU operands + bf16 intermediates: looser tolerance than the all-f32 version.
    assert jnp.allclose(out, ref, atol=5e-2, rtol=5e-2), max_err

    print("KERNEL_OK")
</pallas_src>

<mosaic_0001>
module attributes {stable_mosaic.version = 11 : i64} {
  func.func @_matmul_kernel(%arg0: i32, %arg1: i32, %arg2: i32, %arg3: memref<32x64xf32, #tpu.memory_space<vmem>>, %arg4: memref<64x192xbf16, #tpu.memory_space<vmem>>, %arg5: memref<1x192xf32, #tpu.memory_space<vmem>>, %arg6: memref<32x192xbf16, #tpu.memory_space<vmem>>, %arg7: memref<32x192xf32, #tpu.memory_space<vmem>>) attributes {dimension_semantics = [#tpu.dimension_semantics<parallel>, #tpu.dimension_semantics<parallel>, #tpu.dimension_semantics<arbitrary>], iteration_bounds = array<i64: 1, 1, 1>, scalar_prefetch = 0 : i64, scratch_operands = 1 : i64, tpu.core_type = #tpu.core_type<tc>, window_params = [{transform_indices = @transform_0, window_bounds = array<i64: 32, 64>}, {transform_indices = @transform_1, window_bounds = array<i64: 64, 192>}, {transform_indices = @transform_2, window_bounds = array<i64: 1, 192>}, {transform_indices = @transform_3, window_bounds = array<i64: 32, 192>}]} {
    %c0_i32 = arith.constant 0 : i32
    %0 = arith.cmpi eq, %arg2, %c0_i32 : i32
    %1 = arith.extui %0 : i1 to i32
    %c0_i32_0 = arith.constant 0 : i32
    %2 = arith.cmpi ne, %1, %c0_i32_0 : i32
    scf.if %2 {
      %cst_10 = arith.constant 0.000000e+00 : f32
      %13 = vector.broadcast %cst_10 : f32 to vector<32x192xf32>
      %c0_11 = arith.constant 0 : index
      %c0_12 = arith.constant 0 : index
      %14 = vector.load %arg7[%c0_11, %c0_12] : memref<32x192xf32, #tpu.memory_space<vmem>>, vector<32x192xf32>
      tpu.vector_store %arg7[%c0_11, %c0_12], %13 {strides = array<i32>} : memref<32x192xf32, #tpu.memory_space<vmem>>, vector<32x192xf32>,
    } else {
    }
    %c0 = arith.constant 0 : index
    %c0_1 = arith.constant 0 : index
    %3 = vector.load %arg7[%c0, %c0_1] : memref<32x192xf32, #tpu.memory_space<vmem>>, vector<32x192xf32>
    %c0_2 = arith.constant 0 : index
    %c0_3 = arith.constant 0 : index
    %4 = vector.load %arg3[%c0_2, %c0_3] : memref<32x64xf32, #tpu.memory_space<vmem>>, vector<32x64xf32>
    %5 = arith.truncf %4 : vector<32x64xf32> to vector<32x64xbf16>
    %c0_4 = arith.constant 0 : index
    %c0_5 = arith.constant 0 : index
    %6 = vector.load %arg4[%c0_4, %c0_5] : memref<64x192xbf16, #tpu.memory_space<vmem>>, vector<64x192xbf16>
    %cst = arith.constant dense<0.000000e+00> : vector<32x192xf32>
    %7 = tpu.matmul %5, %6, %cst {dimension_numbers = #tpu.dot_dimension_numbers<[1], [0], [0], [1], [0, 0, 1, 1], [], []>} : vector<32x64xbf16>, vector<64x192xbf16>, vector<32x192xf32> -> vector<32x192xf32>
    %8 = arith.addf %3, %7 : vector<32x192xf32>
    %c0_6 = arith.constant 0 : index
    %c0_7 = arith.constant 0 : index
    %9 = vector.load %arg7[%c0_6, %c0_7] : memref<32x192xf32, #tpu.memory_space<vmem>>, vector<32x192xf32>
    tpu.vector_store %arg7[%c0_6, %c0_7], %8 {strides = array<i32>} : memref<32x192xf32, #tpu.memory_space<vmem>>, vector<32x192xf32>,
    %c0_i32_8 = arith.constant 0 : i32
    %10 = arith.cmpi eq, %arg2, %c0_i32_8 : i32
    %11 = arith.extui %10 : i1 to i32
    %c0_i32_9 = arith.constant 0 : i32
    %12 = arith.cmpi ne, %11, %c0_i32_9 : i32
    scf.if %12 {
      %c0_10 = arith.constant 0 : index
      %c0_11 = arith.constant 0 : index
      %13 = vector.load %arg7[%c0_10, %c0_11] : memref<32x192xf32, #tpu.memory_space<vmem>>, vector<32x192xf32>
      %c0_12 = arith.constant 0 : index
      %c0_13 = arith.constant 0 : index
      %14 = vector.load %arg5[%c0_12, %c0_13] : memref<1x192xf32, #tpu.memory_space<vmem>>, vector<1x192xf32>
      %15 = vector.broadcast %14 : vector<1x192xf32> to vector<32x192xf32>
      %16 = arith.addf %13, %15 : vector<32x192xf32>
      %17 = arith.truncf %16 : vector<32x192xf32> to vector<32x192xbf16>
      %c0_14 = arith.constant 0 : index
      %c0_15 = arith.constant 0 : index
      %18 = vector.load %arg6[%c0_14, %c0_15] : memref<32x192xbf16, #tpu.memory_space<vmem>>, vector<32x192xbf16>
      tpu.vector_store %arg6[%c0_14, %c0_15], %17 {strides = array<i32>} : memref<32x192xbf16, #tpu.memory_space<vmem>>, vector<32x192xbf16>,
    } else {
    }
    return
  }
  func.func @transform_0(%arg0: i32, %arg1: i32, %arg2: i32) -> (i32, i32) {
    %c0_i32 = arith.constant 0 : i32
    return %arg0, %arg2 : i32, i32
  }
  func.func @transform_1(%arg0: i32, %arg1: i32, %arg2: i32) -> (i32, i32) {
    %c0_i32 = arith.constant 0 : i32
    return %arg2, %arg1 : i32, i32
  }
  func.func @transform_2(%arg0: i32, %arg1: i32, %arg2: i32) -> (i32, i32) {
    %c0_i32 = arith.constant 0 : i32
    %c0_i32_0 = arith.constant 0 : i32
    return %c0_i32, %arg1 : i32, i32
  }
  func.func @transform_3(%arg0: i32, %arg1: i32, %arg2: i32) -> (i32, i32) {
    %c0_i32 = arith.constant 0 : i32
    return %arg0, %arg1 : i32, i32
  }
}

</mosaic_0001>

<bundles_post_ra>
// kernel: tpu_custom_call.1
= control target key start
LH: loop header
LB: loop body
LE: loop exit
PB: predicated region body
PF: predicated region fallthrough
CT: control target
= control target key end

     0   :  { %8 = vsyncpa [#allocation4], 0  ;;  %s477_s0 = inlined_call_operand.hbm [shape: f32[32,64], index: 0, kind: input, shape index: {}]   ;;  %s478_s1 = inlined_call_operand.hbm [shape: bf16[64,192], index: 1, kind: input, shape index: {}]   ;;  %s479_s2 = inlined_call_operand.vmem [shape: f32[1,192], index: 2, kind: input, shape index: {}]   ;;  %s480_s3 = inlined_call_operand.hbm [shape: bf16[32,192], index: 3, kind: output, shape index: {}]  }
   0x1   :  { %9 = vsyncpa [#allocation7], 0 }
   0x2   :  { %10 = vsyncpa [#allocation5], 0  ;;  %s392_s12 = smov [#allocation3]   ;;  %s320_s16 = scalar_lea.hbm %s477_s0, 512 }
   0x3   :  { %s16_s13 = sshll.u32 %s392_s12, 4  ;;  %p321_p0 = scmp.ne.s32.totalorder %s477_s0, %s320_s16  ;;  %s17_s13 = int_to_ptr.vmem [resolvable:$true] %s16_s13 }
   0x4   :  { %p324_p1 = scmp.lt.u32.totalorder %s320_s16, %s477_s0 }
   0x6   :  { %p326_p2 = pnand %p324_p1, %p321_p0 }
   0x8   :  { %329 = shalt.err (!%p326_p2)
}
   0x9   :  { %s330_s21 = scalar_lea.vmem %s17_s13, 512  ;;  %p335_p4 = scmp.lt.s32.totalorder %s17_s13, %s17_s13 }
   0xa   :  { %p331_p3 = scmp.ne.s32.totalorder %s17_s13, %s330_s21  ;;  %p336_p5 = scmp.lt.s32.totalorder %s330_s21, %s330_s21 }
   0xc   :  { %p337_p6 = por %p336_p5, %p335_p4 }
   0xe   :  { %p338_p7 = pnand %p337_p6, %p331_p3 }
  0x10   :  { %341 = shalt.err (!%p338_p7)
}
  0x11   :  { %s393_s22 = smov 128   ;;  %s394_s23 = smov 8  }
  0x12   :  { %22 = dma.hbm_to_vmem [thread:$0]  %s477_s0, 512, %s17_s13, [#allocation4], %s393_s22, %s393_s22, %s394_s23  }
  0x13   :  { %s395_s26 = smov [#allocation6]   ;;  %s342_s30 = scalar_lea.hbm %s478_s1, 1024 }
  0x14   :  { %s28_s27 = sshll.u32 %s395_s26, 4  ;;  %p343_p8 = scmp.ne.s32.totalorder %s478_s1, %s342_s30  ;;  %s29_s27 = int_to_ptr.vmem [resolvable:$true] %s28_s27 }
  0x15   :  { %p346_p9 = scmp.lt.u32.totalorder %s342_s30, %s478_s1 }
  0x17   :  { %p348_p10 = pnand %p346_p9, %p343_p8 }
  0x19   :  { %351 = shalt.err (!%p348_p10)
}
  0x1a   :  { %s352_s8 = scalar_lea.vmem %s29_s27, 1024  ;;  %p357_p12 = scmp.lt.s32.totalorder %s29_s27, %s29_s27 }
  0x1b   :  { %p353_p11 = scmp.ne.s32.totalorder %s29_s27, %s352_s8  ;;  %p358_p13 = scmp.lt.s32.totalorder %s352_s8, %s352_s8 }
  0x1d   :  { %p359_p0 = por %p358_p13, %p357_p12 }
  0x1f   :  { %p360_p1 = pnand %p359_p0, %p353_p11 }
  0x21   :  { %363 = shalt.err (!%p360_p1)
}
  0x22   :  { %34 = dma.hbm_to_vmem [thread:$0]  %s478_s1, 1024, %s29_s27, [#allocation7], %s393_s22, %s393_s22, %s394_s23  }
  0x23   :  { %386 = dma.done.wait [#allocation4], 512  }
  0x24   :  { %387 = vsyncadd [#allocation4], 4294966784 }
  0x25   :  { %388 = dma.done.wait [#allocation7], 1024  }
  0x26   :  { %389 = vsyncadd [#allocation7], 4294966272  ;;  %vm49_vm0 = vcmask 523264   ;;  %v396_v0 = vmov 0   ;;  %v397_v1 = vmov 0.0   ;;  %v65_v10 = vld [vmem:[#allocation3] sm:$0xff]  ;;  %v208_v16 = vlaneseq }
  0x27   :  { %158 = vmatprep.mubr.bf16.mxu0 %v396_v0  ;;  %168 = vmatprep.mubr.bf16.mxu1 %v396_v0  ;;  %50 = vst.msk [vmem:[#allocation2 + $0x8] sm:$0xff] %vm49_vm0, %v397_v1  ;;  %52 = vst.msk [vmem:[#allocation2 + $0x18] sm:$0xff] %vm49_vm0, %v397_v1  ;;  %v308_v2 = vld [vmem:[#allocation6 + $0x4] ss:$8 sps:$4 sm:$0xff]   ;;  %v310_v3 = vld [vmem:[#allocation6] ss:$8 sps:$4 sm:$0xff]  }
  0x28   :  { %54 = vst.msk [vmem:[#allocation2 + $0x28] sm:$0xff] %vm49_vm0, %v397_v1  ;;  %56 = vst.msk [vmem:[#allocation2 + $0x38] sm:$0xff] %vm49_vm0, %v397_v1  ;;  %126 = vmatprep.subr.bf16.mxu0 %v308_v2  ;;  %293 = vmatprep.subr.bf16.mxu1 %v308_v2  ;;  %v311_v4 = vld [vmem:[#allocation6 + $0x14] ss:$8 sps:$4 sm:$0xff]   ;;  %v313_v5 = vld [vmem:[#allocation6 + $0x10] ss:$8 sps:$4 sm:$0xff]  }
  0x29   :  { %127 = vmatpush1.bf16.msra.mxu0 %v310_v3  ;;  %297 = vmatpush1.bf16.msra.mxu1 %v310_v3  ;;  %v314_v6 = vld [vmem:[#allocation6 + $0x24] ss:$8 sps:$4 sm:$0xff]   ;;  %v316_v7 = vld [vmem:[#allocation6 + $0x20] ss:$8 sps:$4 sm:$0xff]   ;;  %v317_v8 = vld [vmem:[#allocation6 + $0x34] ss:$8 sps:$4 sm:$0xff]  }
  0x2a   :  { %128 = vmatprep.subr.bf16.mxu0 %v311_v4  ;;  %294 = vmatprep.subr.bf16.mxu1 %v311_v4  ;;  %v319_v9 = vld [vmem:[#allocation6 + $0x30] ss:$8 sps:$4 sm:$0xff]   ;;  %v66_v11 = vld [vmem:[#allocation3 + $0x8] sm:$0xff]  ;;  %v209_v21 = vshrl.u32 %v208_v16, 7  ;;  %v206_v36 = vld [vmem:[%s479_s2] sm:$0x3] }
  0x2b   :  { %v67_v12 = vld [vmem:[#allocation3 + $0x10] sm:$0xff]  ;;  %v68_v13 = vld [vmem:[#allocation3 + $0x18] sm:$0xff]  ;;  %v69_v14 = vpack.c.bf16 %v66_v11, %v65_v10  ;;  %vm250_vm1 = vcmask 1043456   ;;  %vm251_vm2 = vcmask 523268   ;;  %s398_s2 = smov [#allocation8]  }
  0x2c   :  { %v70_v15 = vpack.c.bf16 %v68_v13, %v67_v12  ;;  %v210_v34 = vsub.s32 0, %v209_v21  ;;  %v214_v35 = vsub.s32 1, %v209_v21  ;;  %vm252_vm3 = vmor %vm251_vm2, %vm250_vm1  ;;  %s262_s11 = sshll.u32 %s398_s2, 4  ;;  %s263_s11 = int_to_ptr.vmem [resolvable:$true] %s262_s11 }
  0x2d   :  { %129 = vmatpush1.bf16.msra.mxu0 %v313_v5  ;;  %298 = vmatpush1.bf16.msra.mxu1 %v313_v5  ;;  %s364_s12 = scalar_lea.vmem %s263_s11, 512  ;;  %p369_p3 = scmp.lt.s32.totalorder %s263_s11, %s263_s11 }
  0x2e   :  { %130 = vmatprep.subr.bf16.mxu0 %v314_v6  ;;  %295 = vmatprep.subr.bf16.mxu1 %v314_v6  ;;  %v58_v17 = vld [vmem:[#allocation2 + $0x8] sm:$0xff]  ;;  %v60_v24 = vld [vmem:[#allocation2 + $0x18] sm:$0xff]  ;;  %v211_v37 = vrot.slane %v206_v36, %v210_v34  ;;  %v215_v38 = vrot.slane %v206_v36, %v214_v35  ;;  %p365_p2 = scmp.ne.s32.totalorder %s263_s11, %s364_s12  ;;  %p370_p4 = scmp.lt.s32.totalorder %s364_s12, %s364_s12 }
  0x2f   :  { %v62_v18 = vld [vmem:[#allocation2 + $0x28] sm:$0xff]  ;;  %v64_v25 = vld [vmem:[#allocation2 + $0x38] sm:$0xff] }
  0x30   :  { %p371_p5 = por %p370_p4, %p369_p3 }
  0x31   :  { %131 = vmatpush1.bf16.msra.mxu0 %v316_v7  ;;  %299 = vmatpush1.bf16.msra.mxu1 %v316_v7 }
  0x32   :  { %132 = vmatprep.subr.bf16.mxu0 %v317_v8  ;;  %296 = vmatprep.subr.bf16.mxu1 %v317_v8  ;;  %p372_p6 = pnand %p371_p5, %p365_p2 }
  0x35   :  { %133 = vmatpush1.bf16.msra.mxu0 %v319_v9  ;;  %300 = vmatpush1.bf16.msra.mxu1 %v319_v9 }
  0x38   :  { %283 = vmatmul.mubr.msk.bf16.vlgmr.msra.gmra.mrb[0].mxu0 %vm49_vm0, %v69_v14  ;;  %284 = vmatmul.mubr.msk.bf16.vlgmr.msra.gmra.mrb[0].mxu1 %vm49_vm0, %v70_v15 }
 0x10b   :  { %v160_v19 = vpop.f32.mrb[0].mxu0  ;;  %v170_v20 = vpop.f32.mrb[0].mxu1 }
 0x10c   :  { %v162_v22 = vpop.f32.mrb[1].mxu0  ;;  %v172_v23 = vpop.f32.mrb[1].mxu1  ;;  %v218_v41 = vadd.f32 %v211_v37, %v160_v19  ;;  %v222_v43 = vadd.f32 %v211_v37, %v170_v20 }
 0x10d   :  { %v180_v26 = vadd.f32 %v162_v22, %v58_v17  ;;  %v184_v27 = vadd.f32 %v172_v23, %v62_v18  ;;  %v164_v28 = vpop.f32.mrb[2].mxu0  ;;  %v174_v29 = vpop.f32.mrb[2].mxu1 }
 0x10e   :  { %v166_v30 = vpop.f32.mrb[3].mxu0  ;;  %v176_v31 = vpop.f32.mrb[3].mxu1  ;;  %v220_v47 = vadd.f32 %v211_v37, %v164_v28  ;;  %v224_v48 = vadd.f32 %v211_v37, %v174_v29 }
 0x10f   :  { %188 = vst.msk [vmem:[#allocation2 + $0x8] sm:$0xff] %vm49_vm0, %v180_v26  ;;  %192 = vst.msk [vmem:[#allocation2 + $0x28] sm:$0xff] %vm49_vm0, %v184_v27  ;;  %v182_v32 = vadd.f32 %v166_v30, %v60_v24  ;;  %v186_v33 = vadd.f32 %v176_v31, %v64_v25 }
 0x111   :  { %190 = vst.msk [vmem:[#allocation2 + $0x18] sm:$0xff] %vm49_vm0, %v182_v32  ;;  %194 = vst.msk [vmem:[#allocation2 + $0x38] sm:$0xff] %vm49_vm0, %v186_v33 }
 0x116   :  { %v199_v39 = vld [vmem:[#allocation2 + $0x8] sm:$0xff] }
 0x117   :  { %v203_v40 = vld [vmem:[#allocation2 + $0x28] sm:$0xff]  ;;  %v219_v42 = vadd.f32 %v215_v38, %v199_v39 }
 0x118   :  { %v223_v44 = vadd.f32 %v215_v38, %v203_v40  ;;  %v201_v45 = vld [vmem:[#allocation2 + $0x18] sm:$0xff] }
 0x119   :  { %v205_v46 = vld [vmem:[#allocation2 + $0x38] sm:$0xff]  ;;  %v221_v49 = vadd.f32 %v215_v38, %v201_v45  ;;  %v289_v51 = vpack.c.bf16 %v219_v42, %v218_v41 }
 0x11a   :  { %v225_v50 = vadd.f32 %v215_v38, %v205_v46  ;;  %v291_v52 = vpack.c.bf16 %v223_v44, %v222_v43 }
 0x11b   :  { %v290_v53 = vpack.c.bf16 %v221_v49, %v220_v47  ;;  %253 = vst.msk [vmem:[#allocation8] sm:$0xff] %vm252_vm3, %v289_v51 }
 0x11c   :  { %v292_v54 = vpack.c.bf16 %v225_v50, %v224_v48  ;;  %255 = vst.msk [vmem:[#allocation8 + $0x10] sm:$0xff] %vm252_vm3, %v291_v52 }
 0x11d   :  { %254 = vst.msk [vmem:[#allocation8 + $0x8] sm:$0xff] %vm252_vm3, %v290_v53 }
 0x11e   :  { %256 = vst.msk [vmem:[#allocation8 + $0x18] sm:$0xff] %vm252_vm3, %v292_v54 }
 0x11f   :  { %375 = shalt.err (!%p372_p6)
}
 0x120   :  { %s376_s15 = scalar_lea.hbm %s480_s3, 512 }
 0x121   :  { %p377_p7 = scmp.ne.s32.totalorder %s480_s3, %s376_s15  ;;  %p380_p8 = scmp.lt.u32.totalorder %s376_s15, %s480_s3 }
 0x123   :  { %p382_p9 = pnand %p380_p8, %p377_p7 }
 0x125   :  { %385 = shalt.err (!%p382_p9)
}
 0x126   :  { %268 = dma.vmem_to_hbm [thread:$0]  %s263_s11, 512, %s480_s3, [#allocation5], %s393_s22, %s393_s22, %s394_s23  }
 0x127   :  { %390 = dma.done.wait [#allocation5], 512  }
 0x128   :  { %391 = vsyncadd [#allocation5], 4294966784 }
 0x129   :  { %272 = vsyncpa [#allocation4], 1 }
 0x12a   :  { %273 = vsyncpa [#allocation7], 1 }
 0x12b   :  { %274 = vsyncpa [#allocation5], 1 }

</bundles_post_ra>
